<compile_context>
chip_gen: v5e
topology: v5e:2x2
jax: 0.10.0
libtpu: 0.0.40
codegen_flags: <defaults>
</compile_context>

<pallas_src>
import functools

import jax
import jax.numpy as jnp
from jax.experimental import pallas as pl
from jax.experimental.pallas import tpu as pltpu


def _focal_kernel(*refs, gamma, hw, t_lanes, has_alpha):
    """Grid = (N, hw_tiles). One step processes a (C, t_lanes) tile of one batch row."""
    if has_alpha:
        x_ref, t_ref, a_ref, o_ref, acc_ref = refs
    else:
        x_ref, t_ref, o_ref, acc_ref = refs
        a_ref = None

    j = pl.program_id(1)

    @pl.when(j == 0)
    def _():
        acc_ref[...] = jnp.zeros_like(acc_ref)

    x = x_ref[0].astype(jnp.float32)            # (C, T) logits, classes on sublanes
    t = t_ref[0]                                # (1, T) int32 targets

    # log-softmax over the class (sublane) axis, per lane (per spatial position)
    m = jnp.max(x, axis=0, keepdims=True)       # (1, T)
    z = x - m                                   # (C, T)
    lse = jnp.log(jnp.sum(jnp.exp(z), axis=0, keepdims=True))  # (1, T)

    # gather log p_t directly: z_t - lse (no full log-softmax materialized)
    cls = jax.lax.broadcasted_iota(jnp.int32, x.shape, 0)       # (C, T)
    onehot = cls == t                                           # (C, T) bool
    z_t = jnp.sum(jnp.where(onehot, z, 0.0), axis=0, keepdims=True)  # (1, T)
    logpt = z_t - lse                                           # (1, T)
    pt = jnp.exp(logpt)

    if has_alpha:
        # per-class alpha gathered by target class, broadcast (C,1) -> (C,T)
        at = jnp.sum(jnp.where(onehot, a_ref[...], 0.0), axis=0, keepdims=True)
        logpt = logpt * at

    om = jnp.maximum(1.0 - pt, 0.0)             # clamp fp jitter so sqrt stays real
    if gamma == 0.5:
        focal = jnp.sqrt(om)                    # single EUP op instead of exp(log(.))
    elif gamma == 0.0:
        focal = jnp.ones_like(om)
    elif gamma == 1.0:
        focal = om
    elif gamma == 2.0:
        focal = om * om
    else:
        focal = om ** gamma

    loss = -focal * logpt                       # (1, T)

    # mask lanes past the true spatial extent (last tile may overhang H*W)
    pos = jax.lax.broadcasted_iota(jnp.int32, loss.shape, 1) + j * t_lanes
    loss = jnp.where(pos < hw, loss, 0.0)

    acc_ref[...] += loss                        # lane-dense VPU accumulate

    @pl.when(j == pl.num_programs(1) - 1)
    def _():
        o_ref[...] = jnp.sum(acc_ref[...]).reshape(1, 1, 1)


def _choose_tile(hw, c):
    """Pick a lane tile: large (amortize per-step overhead) but VMEM-safe for big C."""
    if hw <= 128:
        return hw  # full spatial extent (satisfies the 'equal full dim' layout rule)
    # keep one double-buffered logits tile around <= ~4 MiB even for large C
    max_lanes_by_vmem = max(128, (4 * 1024 * 1024) // (4 * c))
    t = min(4096, hw, max_lanes_by_vmem)
    return max(128, (t // 128) * 128)


def focal_loss(logits_nchw, target_nhw, *, gamma=0.5, alpha=None, size_average=True):
    """Pallas FocalLoss forward.

    logits_nchw: (N, C, H, W) float
    target_nhw : (N, H, W) integer class indices
    alpha      : None | float (-> [alpha, 1-alpha], assumes classes {0,1}) | list per-class
    """
    N, C, H, W = logits_nchw.shape
    HW = H * W

    # zero-copy reshapes: spatial axis on lanes, classes on sublanes
    x = logits_nchw.reshape(N, C, HW)
    t = target_nhw.reshape(N, 1, HW).astype(jnp.int32)

    T = _choose_tile(HW, C)
    n_tiles = pl.cdiv(HW, T)

    has_alpha = alpha is not None
    inputs = [x, t]
    in_specs = [
        pl.BlockSpec((1, C, T), lambda n, j: (n, 0, j)),   # logits tile
        pl.BlockSpec((1, 1, T), lambda n, j: (n, 0, j)),   # targets tile (lane-dense)
    ]
    if has_alpha:
        if isinstance(alpha, (float, int)):
            # NOTE: matches the PyTorch module, which only defines weights for classes
            # {0, 1} when alpha is scalar; targets >= 2 would be out of range there.
            a_vec = jnp.asarray([alpha, 1.0 - alpha], jnp.float32)
        else:
            a_vec = jnp.asarray(alpha, jnp.float32)
        if a_vec.shape[0] < C:
            a_vec = jnp.pad(a_vec, (0, C - a_vec.shape[0]))
        a_vec = a_vec[:C].reshape(C, 1)
        inputs.append(a_vec)
        in_specs.append(pl.BlockSpec((C, 1), lambda n, j: (0, 0)))

    kernel = functools.partial(_focal_kernel, gamma=float(gamma), hw=HW,
                               t_lanes=T, has_alpha=has_alpha)

    # Per-batch-row partial sums -> safe under a parallel N axis (v7x megacore).
    # TODO(synk): for N == 1 workloads, additionally chunk the HW axis into a
    # parallel leading grid dim to use both v7x TensorCores.
    partial_sums = pl.pallas_call(
        kernel,
        out_shape=jax.ShapeDtypeStruct((N, 1, 1), jnp.float32),
        grid_spec=pltpu.PrefetchScalarGridSpec(
            num_scalar_prefetch=0,
            grid=(N, n_tiles),
            in_specs=in_specs,
            out_specs=pl.BlockSpec((1, 1, 1), lambda n, j: (n, 0, 0)),
            scratch_shapes=[pltpu.VMEM((1, T), jnp.float32)],
        ),
        compiler_params=pltpu.CompilerParams(
            dimension_semantics=("parallel", "arbitrary")),
    )(*inputs)

    total = jnp.sum(partial_sums)
    M = N * HW
    if size_average:
        return total / M
    return total


def _ref_focal_loss(logits_nchw, target_nhw, gamma=0.5, alpha=None, size_average=True):
    """Pure-JAX reference mirroring the PyTorch forward."""
    N, C, H, W = logits_nchw.shape
    x = jnp.transpose(logits_nchw.reshape(N, C, H * W), (0, 2, 1)).reshape(-1, C)
    t = target_nhw.reshape(-1).astype(jnp.int32)
    logsm = jax.nn.log_softmax(x, axis=-1)
    logpt = jnp.take_along_axis(logsm, t[:, None], axis=1)[:, 0]
    pt = jnp.exp(logpt)
    if alpha is not None:
        if isinstance(alpha, (float, int)):
            a = jnp.asarray([alpha, 1.0 - alpha], jnp.float32)
        else:
            a = jnp.asarray(alpha, jnp.float32)
        logpt = logpt * a[t]
    loss = -1.0 * (1.0 - pt) ** gamma * logpt
    return loss.mean() if size_average else loss.sum()


if __name__ == "__main__":
    key = jax.random.PRNGKey(0)
    k1, k2, k3, k4 = jax.random.split(key, 4)

    # main example: N=2, C=4, 16x16 spatial
    N, C, H, W = 2, 4, 16, 16
    logits = jax.random.normal(k1, (N, C, H, W), jnp.float32)
    target = jax.random.randint(k2, (N, H, W), 0, C, jnp.int32)

    out = focal_loss(logits, target, gamma=0.5, alpha=None, size_average=True)
    out = jax.block_until_ready(out)
    ref = _ref_focal_loss(logits, target, gamma=0.5, alpha=None, size_average=True)
    assert jnp.allclose(out, ref, rtol=1e-5, atol=1e-5), (out, ref)

    # per-class alpha + sum reduction path
    alpha_list = [0.25, 0.75, 0.5, 0.5]
    out_a = focal_loss(logits, target, gamma=0.5, alpha=alpha_list, size_average=False)
    out_a = jax.block_until_ready(out_a)
    ref_a = _ref_focal_loss(logits, target, gamma=0.5, alpha=alpha_list, size_average=False)
    assert jnp.allclose(out_a, ref_a, rtol=1e-5, atol=1e-5), (out_a, ref_a)

    # ragged spatial extent (HW not a multiple of the lane tile) exercises the mask
    H2, W2 = 17, 19
    logits2 = jax.random.normal(k3, (N, C, H2, W2), jnp.float32)
    target2 = jax.random.randint(k4, (N, H2, W2), 0, C, jnp.int32)
    out2 = focal_loss(logits2, target2, gamma=0.5, alpha=None, size_average=True)
    out2 = jax.block_until_ready(out2)
    ref2 = _ref_focal_loss(logits2, target2, gamma=0.5, alpha=None, size_average=True)
    assert jnp.allclose(out2, ref2, rtol=1e-5, atol=1e-5), (out2, ref2)

    print("KERNEL_OK")
</pallas_src>

<mosaic_0001>
module attributes {stable_mosaic.version = 11 : i64} {
  func.func @_focal_kernel(%arg0: i32, %arg1: i32, %arg2: memref<1x4x256xf32, #tpu.memory_space<vmem>>, %arg3: memref<1x1x256xi32, #tpu.memory_space<vmem>>, %arg4: memref<1x1x1xf32, #tpu.memory_space<vmem>>, %arg5: memref<1x256xf32, #tpu.memory_space<vmem>>) attributes {dimension_semantics = [#tpu.dimension_semantics<parallel>, #tpu.dimension_semantics<arbitrary>], iteration_bounds = array<i64: 2, 1>, scalar_prefetch = 0 : i64, scratch_operands = 1 : i64, tpu.core_type = #tpu.core_type<tc>, window_params = [{transform_indices = @transform_0, window_bounds = array<i64: 1, 4, 256>}, {transform_indices = @transform_1, window_bounds = array<i64: 1, 1, 256>}, {transform_indices = @transform_2, window_bounds = array<i64: 1, 1, 1>}]} {
    %c0_i32 = arith.constant 0 : i32
    %0 = arith.cmpi eq, %arg1, %c0_i32 : i32
    %1 = arith.extui %0 : i1 to i32
    %c0_i32_0 = arith.constant 0 : i32
    %2 = arith.cmpi ne, %1, %c0_i32_0 : i32
    scf.if %2 {
      %cst_20 = arith.constant 0.000000e+00 : f32
      %46 = vector.broadcast %cst_20 : f32 to vector<1x256xf32>
      %c0_21 = arith.constant 0 : index
      %c0_22 = arith.constant 0 : index
      %47 = vector.load %arg5[%c0_21, %c0_22] : memref<1x256xf32, #tpu.memory_space<vmem>>, vector<1x256xf32>
      tpu.vector_store %arg5[%c0_21, %c0_22], %46 {strides = array<i32>} : memref<1x256xf32, #tpu.memory_space<vmem>>, vector<1x256xf32>,
    } else {
    }
    %c0 = arith.constant 0 : index
    %c0_1 = arith.constant 0 : index
    %c0_2 = arith.constant 0 : index
    %3 = vector.load %arg2[%c0, %c0_1, %c0_2] : memref<1x4x256xf32, #tpu.memory_space<vmem>>, vector<1x4x256xf32>
    %4 = vector.shape_cast %3 : vector<1x4x256xf32> to vector<4x256xf32>
    %c0_3 = arith.constant 0 : index
    %c0_4 = arith.constant 0 : index
    %c0_5 = arith.constant 0 : index
    %5 = vector.load %arg3[%c0_3, %c0_4, %c0_5] : memref<1x1x256xi32, #tpu.memory_space<vmem>>, vector<1x1x256xi32>
    %6 = vector.shape_cast %5 : vector<1x1x256xi32> to vector<1x256xi32>
    %cst = arith.constant dense<0xFF800000> : vector<256xf32>
    %7 = vector.multi_reduction <maximumf>, %4, %cst [0] : vector<4x256xf32> to vector<256xf32>
    %8 = vector.shape_cast %7 : vector<256xf32> to vector<1x256xf32>
    %9 = vector.broadcast %8 : vector<1x256xf32> to vector<4x256xf32>
    %10 = arith.subf %4, %9 : vector<4x256xf32>
    %11 = math.exp %10 : vector<4x256xf32>
    %cst_6 = arith.constant dense<0.000000e+00> : vector<256xf32>
    %12 = vector.multi_reduction <add>, %11, %cst_6 [0] : vector<4x256xf32> to vector<256xf32>
    %13 = vector.shape_cast %12 : vector<256xf32> to vector<1x256xf32>
    %14 = math.log %13 : vector<1x256xf32>
    %15 = tpu.iota {dimensions = array<i32: 0>} : vector<4x256xi32>
    %16 = vector.broadcast %6 : vector<1x256xi32> to vector<4x256xi32>
    %17 = arith.cmpi eq, %15, %16 : vector<4x256xi32>
    %cst_7 = arith.constant 0.000000e+00 : f32
    %18 = vector.broadcast %cst_7 : f32 to vector<4x256xf32>
    %19 = arith.select %17, %10, %18 : vector<4x256xi1>, vector<4x256xf32>
    %cst_8 = arith.constant dense<0.000000e+00> : vector<256xf32>
    %20 = vector.multi_reduction <add>, %19, %cst_8 [0] : vector<4x256xf32> to vector<256xf32>
    %21 = vector.shape_cast %20 : vector<256xf32> to vector<1x256xf32>
    %22 = arith.subf %21, %14 : vector<1x256xf32>
    %23 = math.exp %22 : vector<1x256xf32>
    %cst_9 = arith.constant 1.000000e+00 : f32
    %24 = vector.broadcast %cst_9 : f32 to vector<1x256xf32>
    %25 = arith.subf %24, %23 : vector<1x256xf32>
    %cst_10 = arith.constant 0.000000e+00 : f32
    %26 = vector.broadcast %cst_10 : f32 to vector<1x256xf32>
    %27 = arith.maximumf %25, %26 : vector<1x256xf32>
    %28 = math.sqrt %27 : vector<1x256xf32>
    %cst_11 = arith.constant 0.000000e+00 : f32
    %29 = vector.broadcast %cst_11 : f32 to vector<1x256xf32>
    %30 = arith.subf %29, %28 : vector<1x256xf32>
    %31 = arith.mulf %30, %22 : vector<1x256xf32>
    %32 = tpu.iota {dimensions = array<i32: 1>} : vector<1x256xi32>
    %c256_i32 = arith.constant 256 : i32
    %33 = arith.muli %arg1, %c256_i32 : i32
    %34 = vector.broadcast %33 : i32 to vector<1x256xi32>
    %35 = arith.addi %32, %34 : vector<1x256xi32>
    %c256_i32_12 = arith.constant 256 : i32
    %36 = vector.broadcast %c256_i32_12 : i32 to vector<1x256xi32>
    %37 = arith.cmpi slt, %35, %36 : vector<1x256xi32>
    %cst_13 = arith.constant 0.000000e+00 : f32
    %38 = vector.broadcast %cst_13 : f32 to vector<1x256xf32>
    %39 = arith.select %37, %31, %38 : vector<1x256xi1>, vector<1x256xf32>
    %c0_14 = arith.constant 0 : index
    %c0_15 = arith.constant 0 : index
    %40 = vector.load %arg5[%c0_14, %c0_15] : memref<1x256xf32, #tpu.memory_space<vmem>>, vector<1x256xf32>
    %41 = arith.addf %40, %39 : vector<1x256xf32>
    %c0_16 = arith.constant 0 : index
    %c0_17 = arith.constant 0 : index
    %42 = vector.load %arg5[%c0_16, %c0_17] : memref<1x256xf32, #tpu.memory_space<vmem>>, vector<1x256xf32>
    tpu.vector_store %arg5[%c0_16, %c0_17], %41 {strides = array<i32>} : memref<1x256xf32, #tpu.memory_space<vmem>>, vector<1x256xf32>,
    %c0_i32_18 = arith.constant 0 : i32
    %43 = arith.cmpi eq, %arg1, %c0_i32_18 : i32
    %44 = arith.extui %43 : i1 to i32
    %c0_i32_19 = arith.constant 0 : i32
    %45 = arith.cmpi ne, %44, %c0_i32_19 : i32
    scf.if %45 {
      %c0_20 = arith.constant 0 : index
      %c0_21 = arith.constant 0 : index
      %46 = vector.load %arg5[%c0_20, %c0_21] : memref<1x256xf32, #tpu.memory_space<vmem>>, vector<1x256xf32>
      %47 = vector.shape_cast %46 : vector<1x256xf32> to vector<1x1x256xf32>
      %cst_22 = arith.constant dense<0.000000e+00> : vector<1xf32>
      %48 = vector.multi_reduction <add>, %47, %cst_22 [1, 2] : vector<1x1x256xf32> to vector<1xf32>
      %49 = vector.shape_cast %48 : vector<1xf32> to vector<1x1x1xf32>
      %50 = vector.extract %49[0, 0, 0] : f32 from vector<1x1x1xf32>
      %51 = vector.broadcast %50 : f32 to vector<1x1x1xf32>
      %c0_23 = arith.constant 0 : index
      %c0_24 = arith.constant 0 : index
      %c0_25 = arith.constant 0 : index
      %52 = vector.load %arg4[%c0_23, %c0_24, %c0_25] : memref<1x1x1xf32, #tpu.memory_space<vmem>>, vector<1x1x1xf32>
      tpu.vector_store %arg4[%c0_23, %c0_24, %c0_25], %51 {strides = array<i32>} : memref<1x1x1xf32, #tpu.memory_space<vmem>>, vector<1x1x1xf32>,
    } else {
    }
    return
  }
  func.func @transform_0(%arg0: i32, %arg1: i32) -> (i32, i32, i32) {
    %c0_i32 = arith.constant 0 : i32
    %c0_i32_0 = arith.constant 0 : i32
    return %arg0, %c0_i32, %arg1 : i32, i32, i32
  }
  func.func @transform_1(%arg0: i32, %arg1: i32) -> (i32, i32, i32) {
    %c0_i32 = arith.constant 0 : i32
    %c0_i32_0 = arith.constant 0 : i32
    return %arg0, %c0_i32, %arg1 : i32, i32, i32
  }
  func.func @transform_2(%arg0: i32, %arg1: i32) -> (i32, i32, i32) {
    %c0_i32 = arith.constant 0 : i32
    %c0_i32_0 = arith.constant 0 : i32
    %c0_i32_1 = arith.constant 0 : i32
    return %arg0, %c0_i32, %c0_i32_0 : i32, i32, i32
  }
}

</mosaic_0001>

<bundles_post_ra>
// kernel: tpu_custom_call.1
= control target key start
LH: loop header
LB: loop body
LE: loop exit
PB: predicated region body
PF: predicated region fallthrough
CT: control target
= control target key end

     0   :  { %7 = vsyncpa [#allocation4], 0  ;;  %s840_s0 = inlined_call_operand.hbm [shape: f32[2,4,256], index: 0, kind: input, shape index: {}]   ;;  %s841_s1 = inlined_call_operand.hbm [shape: s32[2,1,256], index: 1, kind: input, shape index: {}]   ;;  %s842_s2 = inlined_call_operand.vmem [shape: f32[2,1,1], index: 2, kind: output, shape index: {}]  }
   0x1   :  { %9 = vsyncpa [#allocation4 + $0x1], 0 }
   0x2   :  { %10 = vsyncpa [#allocation6], 0 }
   0x3   :  { %12 = vsyncpa [#allocation6 + $0x1], 0  ;;  %s718_s9 = smov 0   ;;  %s720_s10 = smov 0  }
   0x4   :  { %s722_s11 = smov 0   ;;  %s724_s12 = smov 0  }
   0x5   :  { %s726_s13 = smov 0   ;;  %s728_s14 = smov 0  }
   0x6 LB: > { %s494_s15 = sadd.s32 4294967295, %s700_s14   ;;  %s30_s16 = sadd.s32 1, %s696_s13  ;;  %s700_s14 = sphi %s728_s14, %s18_s14   ;;  %s696_s13 = sphi %s726_s13, %s852_s13   ;;  %s692_s12 = sphi %s724_s12, %s851_s12   ;;  %s688_s11 = sphi %s722_s11, %s850_s11   ;;  %s684_s10 = sphi %s720_s10, %s849_s10   ;;  %s680_s9 = sphi %s718_s9, %s848_s9  }
   0x7   : > { %p32_p0 = scmp.ge.s32.totalorder %s30_s16, 2  ;;  %s39_s17 = sadd.s32 1, %s688_s11 }
   0x8   : > { %p46_p1 = scmp.ne.s32.totalorder %s688_s11, %s684_s10  ;;  %p47_p2 = scmp.eq.s32.totalorder %s700_s14, 0 }
   0x9   : > { %s854_s16 = smov (%p32_p0, %s30_s16), 0  ;;  %p52_p4 = scmp.ne.s32.totalorder %s684_s10, %s680_s9 }
   0xa   : > { %p754_p3 = por %p47_p2, %p46_p1  ;;  %s34_s19 = ssub.s32 %s696_s13, %s854_s16 }
   0xb   : > { %p53_p5 = scmp.eq.s32.totalorder %s494_s15, 0  ;;  %p37_p6 = scmp.eq.s32.totalorder %s34_s19, 0 }
   0xc   : > { %p522_p8 = scmp.lt.s32.totalorder %s700_s14, 2  ;;  %s130_s22 = sand.u32 1, %s688_s11  }
   0xd   : > { %p761_p7 = por %p53_p5, %p52_p4  ;;  %s508_s23 = sshll.u32 %s696_s13, 3 }
   0xe   : > { %s767_s21 = scalar_select %p37_p6, %s688_s11, %s39_s17  }
   0xf   : > { %s498_s24 = sshll.u32 %s130_s22, 3  ;;  %s141_s27 = scalar_lea.hbm %s840_s0, %s508_s23 }
  0x10   : > { %s143_s28 = sshll.u32 %s141_s27, 4  ;;  %s134_s29 = scalar_lea.vmem [#allocation3], %s498_s24  ;;  %s144_s28 = int_to_ptr.hbm [resolvable:$true] %s143_s28 }
  0x11   : > { %s145_s30 = sshll.u32 %s134_s29, 4  ;;  %p776_p9 = pnand %p522_p8, %p754_p3  ;;  %s146_s30 = int_to_ptr.vmem [resolvable:$true] %s145_s30 }
  0x12   : > { %p503_p10 = scmp.ge.s32.totalorder %s700_s14, 1  ;;  %p171_p11 = scmp.lt.s32.totalorder %s700_s14, 3 }
  0x13   : > { %s501_s4 = sshll.u32 %s130_s22, 1  ;;  %s131_s5 = scalar_lea.sflag [#allocation4], %s130_s22 }
  0x14   : > { %518 = dma.hbm_to_vmem [thread:$0]  (!%p776_p9), %s144_s28, 128, %s146_s30, %s131_s5  }
  0x15   : > { %p172_p12 = pnand %p503_p10, %p171_p11  ;;  %s502_s6 = sshll.u32 %s696_s13, 1 }
  0x16   : > { %s156_s7 = scalar_lea.vmem [#allocation5], %s501_s4  ;;  %s162_s17 = scalar_lea.hbm %s841_s1, %s502_s6 }
  0x17   : > { %s166_s8 = sshll.u32 %s156_s7, 4  ;;  %s164_s18 = sshll.u32 %s162_s17, 4  ;;  %s167_s8 = int_to_ptr.vmem [resolvable:$true] %s166_s8  ;;  %s165_s18 = int_to_ptr.hbm [resolvable:$true] %s164_s18 }
  0x18   : > { %s153_s19 = scalar_lea.sflag [#allocation6], %s130_s22  ;;  %175 = sbr.rel (%p172_p12) target bundleno = 338 (0x152), region = 28 }
  0x19   : > { %521 = dma.hbm_to_vmem [thread:$0]  (!%p776_p9), %s165_s18, 32, %s167_s8, %s153_s19  }
  0x1a   : > { %s177_s23 = sand.u32 (!%p172_p12), 1, %s684_s10  }
  0x1b   : > { %s504_s24 = sshll.u32 (!%p172_p12), %s177_s23, 3  ;;  %s178_s25 = scalar_lea.sflag (!%p172_p12), [#allocation4], %s177_s23 }
  0x1c   : > { %s181_s26 = scalar_lea.vmem (!%p172_p12), [#allocation3], %s504_s24 }
  0x1d   : > { %671 = dma.done.wait (%p761_p7), %s178_s25, 128  }
  0x1e   : > { %673 = vsyncadd (%p761_p7), %s178_s25, 4294967168  ;;  %s505_s27 = sshll.u32 %s177_s23, 1  ;;  %s188_s28 = scalar_lea.sflag [#allocation6], %s177_s23 }
  0x1f   : > { %s795_s29 = scalar_lea.vmem [#allocation5], %s505_s27 }
  0x20   : > { %675 = dma.done.wait (%p761_p7), %s188_s28, 32  }
  0x21   : > { %677 = vsyncadd (%p761_p7), %s188_s28, 4294967264  ;;  %v225_v0 = vlaneseq  ;;  %v702_v2 = vmov 0.0   ;;  %v230_v3 = vld [vmem:[%s181_s26] sm:$0xff]  ;;  %vm238_vm1 = vcmask 1043456   ;;  %v231_v25 = vld [vmem:[%s795_s29] sm:$0x3] }
  0x22   : > { %233 = vst [vmem:[#allocation1] ss:$2 sm:$0xff] %v230_v3  ;;  %v287_v33 = vperm.slane %v231_v25, 0  ;;  %v288_v34 = vperm.slane %v231_v25, 1  ;;  %vm366_vm8 = vcmask 1040384   ;;  %p218_p13 = scmp.lt.s32.totalorder %s692_s12, 1 }
  0x23   : > { %vm801_vm0 = vcmp.lt.s32.totalorder %v225_v0, 256  ;;  %v286_v30 = vshrl.u32 %v225_v0, 7  ;;  %vm397_vm9 = vcmask 0  }
  0x24   : > { %229 = vst.msk [vmem:[#allocation2] sm:$0x3] %vm801_vm0, %v702_v2  ;;  %s856_s12 = smov (!%p218_p13, %s692_s12), 1 }
  0x25   : > { %vm289_vm2 = vcmp.eq.s32.totalorder %v286_v30, %v287_v33  ;;  %vm290_vm3 = vcmp.eq.s32.totalorder %v286_v30, %v288_v34  ;;  %s220_s30 = scalar_lea.vmem %s842_s2, %s856_s12 }
  0x29   : > { %v234_v4 = vld.sshfl [vmem:[#allocation1] sm:$0xff pattern:$0x75316420]  ;;  %v235_v5 = vld.sshfl [vmem:[#allocation1 + $0x8] sm:$0xff pattern:$0x75316420] }
  0x2a   : > { %v239_v6 = vsel %vm238_vm1, %v234_v4, -inf  ;;  %v246_v7 = vsel %vm238_vm1, %v235_v5, -inf }
  0x2b   : > { %v240_v8 = vrot.slane %v239_v6, 4  ;;  %v247_v9 = vrot.slane %v246_v7, 4 }
  0x2d   : > { %v241_v10 = vmax.f32 %v239_v6, %v240_v8  ;;  %v248_v11 = vmax.f32 %v246_v7, %v247_v9 }
  0x2f   : > { %v242_v12 = vrot.slane %v241_v10, 2  ;;  %v249_v13 = vrot.slane %v248_v11, 2 }
  0x31   : > { %v243_v14 = vmax.f32 %v241_v10, %v242_v12  ;;  %v250_v15 = vmax.f32 %v248_v11, %v249_v13 }
  0x33   : > { %v244_v16 = vrot.slane %v243_v14, 1  ;;  %v251_v17 = vrot.slane %v250_v15, 1 }
  0x35   : > { %v245_v18 = vmax.f32 %v243_v14, %v244_v16  ;;  %v252_v19 = vmax.f32 %v250_v15, %v251_v17 }
  0x37   : > { %v255_v20 = vrot.slane %v252_v19, 4 }
  0x39   : > { %v256_v21 = vsel %vm238_vm1, %v245_v18, %v255_v20 }
  0x3a   : > { %v258_v22 = vsub.f32 %v230_v3, %v256_v21 }
  0x3c   : > { %v259_v23 = vmul.f32 1.442695, %v258_v22 }
  0x3e   : > { %572 = vpow2.f32 %v259_v23 }
  0x44   : > { %v573_v24 = vpop.eup %572 }
  0x45   : > { %262 = vst [vmem:[#allocation1] ss:$2 sm:$0xff] %v573_v24 }
  0x4c   : > { %v263_v26 = vld.sshfl [vmem:[#allocation1] sm:$0xff pattern:$0x75316420]  ;;  %v264_v27 = vld.sshfl [vmem:[#allocation1 + $0x8] sm:$0xff pattern:$0x75316420] }
  0x4d   : > { %v267_v28 = vsel %vm238_vm1, %v263_v26, 0.0  ;;  %v274_v29 = vsel %vm238_vm1, %v264_v27, 0.0  ;;  %292 = vst [vmem:[#allocation1] ss:$2 sm:$0xff] %v258_v22 }
  0x4e   : > { %v268_v31 = vrot.slane %v267_v28, 4  ;;  %v275_v32 = vrot.slane %v274_v29, 4 }
  0x50   : > { %v269_v35 = vadd.f32 %v268_v31, %v267_v28  ;;  %v276_v36 = vadd.f32 %v275_v32, %v274_v29 }
  0x52   : > { %v270_v37 = vrot.slane %v269_v35, 2  ;;  %v277_v38 = vrot.slane %v276_v36, 2 }
  0x54   : > { %v271_v39 = vadd.f32 %v270_v37, %v269_v35  ;;  %v278_v40 = vadd.f32 %v277_v38, %v276_v36  ;;  %v293_v41 = vld.sshfl [vmem:[#allocation1] sm:$0xff pattern:$0x75316420]  ;;  %v294_v42 = vld.sshfl [vmem:[#allocation1 + $0x8] sm:$0xff pattern:$0x75316420] }
  0x55   : > { %v297_v43 = vsel %vm289_vm2, %v293_v41, 0.0  ;;  %v298_v44 = vsel %vm290_vm3, %v294_v42, 0.0  ;;  %v362_v38 = vld [vmem:[#allocation2] sm:$0x3] }
  0x56   : > { %v272_v45 = vrot.slane %v271_v39, 1  ;;  %v279_v46 = vrot.slane %v278_v40, 1  ;;  %v299_v47 = vsel %vm238_vm1, %v297_v43, 0.0  ;;  %v306_v48 = vsel %vm238_vm1, %v298_v44, 0.0 }
  0x57   : > { %v300_v49 = vrot.slane %v299_v47, 4  ;;  %v307_v50 = vrot.slane %v306_v48, 4 }
  0x58   : > { %v273_v51 = vadd.f32 %v272_v45, %v271_v39  ;;  %v280_v52 = vadd.f32 %v279_v46, %v278_v40 }
  0x59   : > { %v301_v53 = vadd.f32 %v300_v49, %v299_v47  ;;  %v308_v54 = vadd.f32 %v307_v50, %v306_v48 }
  0x5a   : > { %574 = vlog2.f32 %v273_v51 }
  0x5b   : > { %576 = vlog2.f32 %v280_v52  ;;  %v302_v55 = vrot.slane %v301_v53, 2  ;;  %v309_v56 = vrot.slane %v308_v54, 2 }
  0x5d   : > { %v303_v57 = vadd.f32 %v302_v55, %v301_v53  ;;  %v310_v58 = vadd.f32 %v309_v56, %v308_v54 }
  0x5f   : > { %v304_v59 = vrot.slane %v303_v57, 1  ;;  %v311_v60 = vrot.slane %v310_v58, 1 }
  0x60   : > { %v575_v61 = vpop.eup %574 }
  0x61   : > { %v577_v62 = vpop.eup %576  ;;  %v282_v63 = vmul.f32 0.6931472, %v575_v61  ;;  %v305_v0 = vadd.f32 %v304_v59, %v303_v57  ;;  %v312_v2 = vadd.f32 %v311_v60, %v310_v58 }
  0x62   : > { %v284_v3 = vmul.f32 0.6931472, %v577_v62 }
  0x63   : > { %v313_v4 = vsub.f32 %v305_v0, %v282_v63 }
  0x64   : > { %v314_v5 = vsub.f32 %v312_v2, %v284_v3 }
  0x65   : > { %v315_v6 = vmul.f32 1.442695, %v313_v4 }
  0x66   : > { %v317_v7 = vmul.f32 1.442695, %v314_v5 }
  0x67   : > { %578 = vpow2.f32 %v315_v6 }
  0x68   : > { %580 = vpow2.f32 %v317_v7 }
  0x6d   : > { %v579_v8 = vpop.eup %578 }
  0x6e   : > { %v581_v9 = vpop.eup %580  ;;  %v319_v10 = vsub.f32 1.0, %v579_v8 }
  0x6f   : > { %v320_v11 = vsub.f32 1.0, %v581_v9 }
  0x70   : > { %v321_v12 = vmax.f32 %v319_v10, 0.0 }
  0x71   : > { %v322_v13 = vmax.f32 %v320_v11, 0.0 }
  0x72   : > { %582 = vrsqrt.f32 %v321_v12  ;;  %vm330_vm4 = vcmp.eq.f32.partialorder %v321_v12, inf  ;;  %v333_v25 = vand.u32 2147483648, %v321_v12  ;;  %vm332_vm5 = vcmp.eq.f32.partialorder %v321_v12, 0.0 }
  0x73   : > { %584 = vrsqrt.f32 %v322_v13  ;;  %vm342_vm6 = vcmp.eq.f32.partialorder %v322_v13, inf  ;;  %v345_v28 = vand.u32 2147483648, %v322_v13  ;;  %vm344_vm7 = vcmp.eq.f32.partialorder %v322_v13, 0.0 }
  0x78   : > { %v583_v14 = vpop.eup %582 }
  0x79   : > { %v585_v15 = vpop.eup %584  ;;  %v324_v16 = vmul.f32 %v583_v14, %v321_v12 }
  0x7a   : > { %v336_v17 = vmul.f32 %v585_v15, %v322_v13 }
  0x7b   : > { %v325_v18 = vmul.f32 %v583_v14, %v324_v16 }
  0x7c   : > { %v337_v19 = vmul.f32 %v585_v15, %v336_v17 }
  0x7d   : > { %v326_v20 = vmul.f32 0.5, %v325_v18 }
  0x7e   : > { %v338_v21 = vmul.f32 0.5, %v337_v19 }
  0x7f   : > { %v327_v22 = vsub.f32 1.5, %v326_v20 }
  0x80   : > { %v339_v23 = vsub.f32 1.5, %v338_v21 }
  0x81   : > { %v328_v24 = vmul.f32 %v583_v14, %v327_v22 }
  0x82   : > { %v340_v26 = vmul.f32 %v585_v15, %v339_v23 }
  0x83   : > { %v329_v27 = vmul.f32 %v328_v24, %v321_v12 }
  0x84   : > { %v341_v29 = vmul.f32 %v340_v26, %v322_v13 }
  0x85   : > { %v331_v30 = vsel %vm330_vm4, %v321_v12, %v329_v27 }
  0x86   : > { %v334_v31 = vsel %vm332_vm5, %v333_v25, %v331_v30  ;;  %v343_v32 = vsel %vm342_vm6, %v322_v13, %v341_v29 }
  0x87   : > { %v346_v33 = vsel %vm344_vm7, %v345_v28, %v343_v32  ;;  %v347_v34 = vsub.f32 0.0, %v334_v31 }
  0x88   : > { %v348_v35 = vsub.f32 0.0, %v346_v33 }
  0x89   : > { %v349_v36 = vmul.f32 %v347_v34, %v313_v4 }
  0x8a   : > { %v350_v37 = vmul.f32 %v348_v35, %v314_v5 }
  0x8c   : > { %v365_v39 = vrot.slane %v350_v37, 7 }
  0x8e   : > { %v367_v40 = vsel %vm366_vm8, %v349_v36, %v365_v39 }
  0x8f   : > { %v369_v41 = vadd.f32 %v367_v40, %v362_v38 }
  0x91   : > { %374 = vst.msk [vmem:[#allocation2] sm:$0x3] %vm801_vm0, %v369_v41 }
  0x98   : > { %v378_v42 = vld [vmem:[#allocation2] sm:$0x3] }
  0x99   : > { %v380_v43 = vperm.slane %v378_v42, 0  ;;  %v381_v44 = vperm.slane %v378_v42, 1 }
  0x9b   : > { %v384_v45 = vsel %vm366_vm8, %v380_v43, 0.0  ;;  %v385_v46 = vsel %vm366_vm8, %v381_v44, 0.0 }
  0x9c   : > { %v386_v47 = vadd.f32 %v385_v46, %v384_v45 }
  0x9e   : > { %387 = vadd.xlane.f32.xlu0 %v386_v47 }
 0x111   : > { %v388_v48 = vpop.xlane.xlu0 %387 }
 0x112   : > { %v389_v49 = vrot.slane %v388_v48, 4 }
 0x114   : > { %v390_v50 = vadd.f32 %v389_v49, %v388_v48 }
 0x116   : > { %v391_v51 = vrot.slane %v390_v50, 2 }
 0x118   : > { %v392_v52 = vadd.f32 %v391_v51, %v390_v50 }
 0x11a   : > { %v393_v53 = vrot.slane %v392_v52, 1 }
 0x11c   : > { %v394_v54 = vadd.f32 %v393_v53, %v392_v52 }
 0x11e   : > { %509 = vpush %v394_v54 }
 0x14f   : > { %s510_s3 = spop %509 }
 0x150   : > { %v396_v1 = vstv %s510_s3 }
 0x151   : > { %398 = vst.msk [vmem:[%s220_s30] sm:$0x1] %vm397_vm9, %v396_v1 }
 0x152 PF: > { %s18_s14 = sadd.s32 1, %s700_s14   ;;  %s848_s9 = smov %s684_s10 }
 0x153   : > { %p15_p0 = scmp.ge.s32.totalorder %s18_s14, 4   ;;  %s849_s10 = smov %s688_s11 }
 0x154   : > { %s850_s11 = smov %s767_s21  ;;  %s851_s12 = smov %s696_s13 }
 0x155   : > { %s852_s13 = smov %s854_s16  ;;  %17 = sbr.rel (!%p15_p0) target bundleno = 6 (0x6), region = 89 }
 0x15a   :  { %416 = vsyncpa [#allocation4], 1 }
 0x15b   :  { %418 = vsyncpa [#allocation4 + $0x1], 1 }
 0x15c   :  { %419 = vsyncpa [#allocation6], 1 }
 0x15d   :  { %421 = vsyncpa [#allocation6 + $0x1], 1 }

</bundles_post_ra>
